<compile_context>
chip_gen: v7x
topology: tpu7x:2x2x1
jax: 0.10.0
libtpu: 0.0.40
codegen_flags: <defaults>
</compile_context>

<pallas_src>
import jax
import jax.numpy as jnp
from jax.experimental import pallas as pl
from jax.experimental.pallas import tpu as pltpu


def fused_conv_kernel(x_ref, w1_ref, b1_ref, w21_ref, b21_ref, o_ref):
    # Lane-dense layout: pixels on the last (128-lane) axis, channels on sublanes.
    #   x_ref   : (Cin,  L)   spatially pre-padded input pixels
    #   w1_ref  : (Cmid, Cin) conv1 1x1 weights
    #   b1_ref  : (Cmid, 1)   conv1 bias
    #   w21_ref : (Cout, Cin) folded conv2.conv1 weights  (W2 @ W1)
    #   b21_ref : (Cout, 1)   folded bias                 (W2 @ b1 + b2)
    #   o_ref   : (Cout, L)
    x = x_ref[...]
    Cin, L = x.shape
    Cmid = w1_ref.shape[0]
    Cout = w21_ref.shape[0]

    # Tiny channel mixes as VPU broadcast-FMAs (18 mults/pixel total).
    v1 = jnp.broadcast_to(b1_ref[...], (Cmid, L))   # v1 = W1 @ x + b1
    v2 = jnp.broadcast_to(b21_ref[...], (Cout, L))  # v2 = W2 @ v1 + b2 (folded onto x)
    for c in range(Cin):
        xc = x[c:c + 1, :]                          # (1, L), broadcasts over sublanes
        v1 = v1 + w1_ref[:, c:c + 1] * xc
        v2 = v2 + w21_ref[:, c:c + 1] * xc

    # v3 = max(v1, v2); v4 = max(v2, v3) == v3 (redundant, dropped); v5 = relu(v4)
    o_ref[...] = jnp.maximum(jnp.maximum(v1, v2), 0.0).astype(o_ref.dtype)


def model_forward(x_nchw, w1, b1, w2, b2, *, max_lane_tile=16384):
    N, Cin, H, W = x_nchw.shape
    Cmid = w1.shape[0]   # 6
    Cout = w2.shape[0]   # 6

    x = x_nchw.astype(jnp.float32)
    # conv1 is a 1x1 conv with padding=1: padded border pixels see only zeros,
    # so v1's border equals bias1 -- exactly what PyTorch computes.  This is
    # the single extra HBM pass in the wrapper (no transposes needed).
    xp = jnp.pad(x, ((0, 0), (0, 0), (1, 1), (1, 1)))
    Hp, Wp = H + 2, W + 2
    P = Hp * Wp
    xf = xp.reshape(N, Cin, P)          # contiguous reshape, no copy

    # 1x1 conv weights (Co, Ci, 1, 1) -> (Co, Ci); fold conv2 over conv1.
    w1m = w1.reshape(Cmid, Cin).astype(jnp.float32)
    w2m = w2.reshape(Cout, Cmid).astype(jnp.float32)
    b1v = b1.astype(jnp.float32)
    b2v = b2.astype(jnp.float32)
    # Explicit broadcast-sums: exact f32, no MXU/default-precision ambiguity.
    w21 = jnp.sum(w2m[:, :, None] * w1m[None, :, :], axis=1)    # (Cout, Cin)
    b21 = jnp.sum(w2m * b1v[None, :], axis=1) + b2v             # (Cout,)

    # Lane tile: full pixel dim if small, else a large multiple of 128
    # (partial last block is masked by Pallas).
    tile_l = P if P <= max_lane_tile else max_lane_tile
    n_l = pl.cdiv(P, tile_l)

    out = pl.pallas_call(
        fused_conv_kernel,
        out_shape=jax.ShapeDtypeStruct((N, Cout, P), jnp.float32),
        grid_spec=pltpu.PrefetchScalarGridSpec(
            num_scalar_prefetch=0,
            grid=(N, n_l),
            in_specs=[
                pl.BlockSpec((None, Cin, tile_l), lambda n, l: (n, 0, l)),
                pl.BlockSpec((Cmid, Cin), lambda n, l: (0, 0)),
                pl.BlockSpec((Cmid, 1), lambda n, l: (0, 0)),
                pl.BlockSpec((Cout, Cin), lambda n, l: (0, 0)),
                pl.BlockSpec((Cout, 1), lambda n, l: (0, 0)),
            ],
            out_specs=pl.BlockSpec((None, Cout, tile_l), lambda n, l: (n, 0, l)),
        ),
        compiler_params=pltpu.CompilerParams(
            dimension_semantics=("parallel", "parallel")),
    )(xf, w1m, b1v.reshape(Cmid, 1), w21, b21.reshape(Cout, 1))

    return out.reshape(N, Cout, Hp, Wp)   # NCHW: (N, 6, H+2, W+2)


def _reference(x_nchw, w1, b1, w2, b2):
    # Plain-JAX reference of the same (aligned) math, in full f32 precision.
    N, Cin, H, W = x_nchw.shape
    xp = jnp.pad(x_nchw.astype(jnp.float32), ((0, 0), (0, 0), (1, 1), (1, 1)))
    w1m = w1.reshape(w1.shape[0], Cin).astype(jnp.float32)
    w2m = w2.reshape(w2.shape[0], w2.shape[1]).astype(jnp.float32)
    hi = jax.lax.Precision.HIGHEST
    v1 = jnp.einsum("oc,nchw->nohw", w1m, xp, precision=hi) + b1.reshape(1, -1, 1, 1)
    v2 = jnp.einsum("oc,nchw->nohw", w2m, v1, precision=hi) + b2.reshape(1, -1, 1, 1)
    v3 = jnp.maximum(v1, v2)
    v4 = jnp.maximum(v2, v3)
    return jnp.maximum(v4, 0.0)


if __name__ == "__main__":
    key = jax.random.PRNGKey(0)
    kx, k1, k2, k3, k4 = jax.random.split(key, 5)

    # Small shapes consistent with the module's 3-channel NCHW input.
    N, Cin, H, W = 2, 3, 16, 16
    Cmid, Cout = 6, 6

    x = jax.random.normal(kx, (N, Cin, H, W), dtype=jnp.float32)
    # Deterministic parameter init (uniform, PyTorch-like fan-in bound).
    bound1 = 1.0 / (Cin ** 0.5)
    bound2 = 1.0 / (Cmid ** 0.5)
    w1 = jax.random.uniform(k1, (Cmid, Cin, 1, 1), jnp.float32, -bound1, bound1)
    b1 = jax.random.uniform(k2, (Cmid,), jnp.float32, -bound1, bound1)
    w2 = jax.random.uniform(k3, (Cout, Cmid, 1, 1), jnp.float32, -bound2, bound2)
    b2 = jax.random.uniform(k4, (Cout,), jnp.float32, -bound2, bound2)

    out = model_forward(x, w1, b1, w2, b2)
    out = jax.block_until_ready(out)

    ref = _reference(x, w1, b1, w2, b2)
    assert out.shape == (N, Cout, H + 2, W + 2), out.shape
    assert jnp.allclose(out, ref, atol=1e-5, rtol=1e-5), "mismatch vs reference"

    print("KERNEL_OK")
</pallas_src>

<mosaic_0001>
module attributes {stable_mosaic.version = 11 : i64} {
  func.func @fused_conv_kernel(%arg0: i32, %arg1: i32, %arg2: memref<1x3x324xf32, #tpu.memory_space<vmem>>, %arg3: memref<6x3xf32, #tpu.memory_space<vmem>>, %arg4: memref<6x1xf32, #tpu.memory_space<vmem>>, %arg5: memref<6x3xf32, #tpu.memory_space<vmem>>, %arg6: memref<6x1xf32, #tpu.memory_space<vmem>>, %arg7: memref<1x6x324xf32, #tpu.memory_space<vmem>>) attributes {dimension_semantics = [#tpu.dimension_semantics<parallel>, #tpu.dimension_semantics<parallel>], iteration_bounds = array<i64: 2, 1>, scalar_prefetch = 0 : i64, scratch_operands = 0 : i64, tpu.core_type = #tpu.core_type<tc>, window_params = [{transform_indices = @transform_0, window_bounds = array<i64: 1, 3, 324>}, {pipeline_mode = #tpu.pipeline_mode<synchronous>, transform_indices = @transform_1, window_bounds = array<i64: 6, 3>}, {pipeline_mode = #tpu.pipeline_mode<synchronous>, transform_indices = @transform_2, window_bounds = array<i64: 6, 1>}, {pipeline_mode = #tpu.pipeline_mode<synchronous>, transform_indices = @transform_3, window_bounds = array<i64: 6, 3>}, {pipeline_mode = #tpu.pipeline_mode<synchronous>, transform_indices = @transform_4, window_bounds = array<i64: 6, 1>}, {transform_indices = @transform_5, window_bounds = array<i64: 1, 6, 324>}]} {
    %c0 = arith.constant 0 : index
    %c0_0 = arith.constant 0 : index
    %c0_1 = arith.constant 0 : index
    %0 = vector.load %arg2[%c0, %c0_0, %c0_1] : memref<1x3x324xf32, #tpu.memory_space<vmem>>, vector<1x3x324xf32>
    %1 = vector.shape_cast %0 : vector<1x3x324xf32> to vector<3x324xf32>
    %c0_2 = arith.constant 0 : index
    %c0_3 = arith.constant 0 : index
    %2 = vector.load %arg4[%c0_2, %c0_3] : memref<6x1xf32, #tpu.memory_space<vmem>>, vector<6x1xf32>
    %3 = vector.shape_cast %2 : vector<6x1xf32> to vector<6x1xf32>
    %4 = vector.broadcast %3 : vector<6x1xf32> to vector<6x324xf32>
    %c0_4 = arith.constant 0 : index
    %c0_5 = arith.constant 0 : index
    %5 = vector.load %arg6[%c0_4, %c0_5] : memref<6x1xf32, #tpu.memory_space<vmem>>, vector<6x1xf32>
    %6 = vector.shape_cast %5 : vector<6x1xf32> to vector<6x1xf32>
    %7 = vector.broadcast %6 : vector<6x1xf32> to vector<6x324xf32>
    %8 = vector.extract_strided_slice %1 {offsets = [0, 0], sizes = [1, 324], strides = [1, 1]} : vector<3x324xf32> to vector<1x324xf32>
    %c0_6 = arith.constant 0 : index
    %c0_7 = arith.constant 0 : index
    %9 = vector.load %arg3[%c0_6, %c0_7] : memref<6x3xf32, #tpu.memory_space<vmem>>, vector<6x1xf32>
    %10 = vector.broadcast %9 : vector<6x1xf32> to vector<6x324xf32>
    %11 = vector.broadcast %8 : vector<1x324xf32> to vector<6x324xf32>
    %12 = arith.mulf %10, %11 : vector<6x324xf32>
    %13 = arith.addf %4, %12 : vector<6x324xf32>
    %c0_8 = arith.constant 0 : index
    %c0_9 = arith.constant 0 : index
    %14 = vector.load %arg5[%c0_8, %c0_9] : memref<6x3xf32, #tpu.memory_space<vmem>>, vector<6x1xf32>
    %15 = vector.broadcast %14 : vector<6x1xf32> to vector<6x324xf32>
    %16 = vector.broadcast %8 : vector<1x324xf32> to vector<6x324xf32>
    %17 = arith.mulf %15, %16 : vector<6x324xf32>
    %18 = arith.addf %7, %17 : vector<6x324xf32>
    %19 = vector.extract_strided_slice %1 {offsets = [1, 0], sizes = [1, 324], strides = [1, 1]} : vector<3x324xf32> to vector<1x324xf32>
    %c0_10 = arith.constant 0 : index
    %c1 = arith.constant 1 : index
    %20 = vector.load %arg3[%c0_10, %c1] : memref<6x3xf32, #tpu.memory_space<vmem>>, vector<6x1xf32>
    %21 = vector.broadcast %20 : vector<6x1xf32> to vector<6x324xf32>
    %22 = vector.broadcast %19 : vector<1x324xf32> to vector<6x324xf32>
    %23 = arith.mulf %21, %22 : vector<6x324xf32>
    %24 = arith.addf %13, %23 : vector<6x324xf32>
    %c0_11 = arith.constant 0 : index
    %c1_12 = arith.constant 1 : index
    %25 = vector.load %arg5[%c0_11, %c1_12] : memref<6x3xf32, #tpu.memory_space<vmem>>, vector<6x1xf32>
    %26 = vector.broadcast %25 : vector<6x1xf32> to vector<6x324xf32>
    %27 = vector.broadcast %19 : vector<1x324xf32> to vector<6x324xf32>
    %28 = arith.mulf %26, %27 : vector<6x324xf32>
    %29 = arith.addf %18, %28 : vector<6x324xf32>
    %30 = vector.extract_strided_slice %1 {offsets = [2, 0], sizes = [1, 324], strides = [1, 1]} : vector<3x324xf32> to vector<1x324xf32>
    %c0_13 = arith.constant 0 : index
    %c2 = arith.constant 2 : index
    %31 = vector.load %arg3[%c0_13, %c2] : memref<6x3xf32, #tpu.memory_space<vmem>>, vector<6x1xf32>
    %32 = vector.broadcast %31 : vector<6x1xf32> to vector<6x324xf32>
    %33 = vector.broadcast %30 : vector<1x324xf32> to vector<6x324xf32>
    %34 = arith.mulf %32, %33 : vector<6x324xf32>
    %35 = arith.addf %24, %34 : vector<6x324xf32>
    %c0_14 = arith.constant 0 : index
    %c2_15 = arith.constant 2 : index
    %36 = vector.load %arg5[%c0_14, %c2_15] : memref<6x3xf32, #tpu.memory_space<vmem>>, vector<6x1xf32>
    %37 = vector.broadcast %36 : vector<6x1xf32> to vector<6x324xf32>
    %38 = vector.broadcast %30 : vector<1x324xf32> to vector<6x324xf32>
    %39 = arith.mulf %37, %38 : vector<6x324xf32>
    %40 = arith.addf %29, %39 : vector<6x324xf32>
    %41 = arith.maximumf %35, %40 : vector<6x324xf32>
    %cst = arith.constant 0.000000e+00 : f32
    %42 = vector.broadcast %cst : f32 to vector<6x324xf32>
    %43 = arith.maximumf %41, %42 : vector<6x324xf32>
    %c0_16 = arith.constant 0 : index
    %c0_17 = arith.constant 0 : index
    %c0_18 = arith.constant 0 : index
    %44 = vector.load %arg7[%c0_16, %c0_17, %c0_18] : memref<1x6x324xf32, #tpu.memory_space<vmem>>, vector<1x6x324xf32>
    %45 = vector.shape_cast %44 : vector<1x6x324xf32> to vector<6x324xf32>
    %46 = vector.shape_cast %43 : vector<6x324xf32> to vector<1x6x324xf32>
    tpu.vector_store %arg7[%c0_16, %c0_17, %c0_18], %46 {strides = array<i32>} : memref<1x6x324xf32, #tpu.memory_space<vmem>>, vector<1x6x324xf32>,
    return
  }
  func.func @transform_0(%arg0: i32, %arg1: i32) -> (i32, i32, i32) {
    %c0_i32 = arith.constant 0 : i32
    %c0_i32_0 = arith.constant 0 : i32
    return %arg0, %c0_i32, %arg1 : i32, i32, i32
  }
  func.func @transform_1(%arg0: i32, %arg1: i32) -> (i32, i32) {
    %c0_i32 = arith.constant 0 : i32
    %c0_i32_0 = arith.constant 0 : i32
    %c0_i32_1 = arith.constant 0 : i32
    return %c0_i32, %c0_i32_0 : i32, i32
  }
  func.func @transform_2(%arg0: i32, %arg1: i32) -> (i32, i32) {
    %c0_i32 = arith.constant 0 : i32
    %c0_i32_0 = arith.constant 0 : i32
    %c0_i32_1 = arith.constant 0 : i32
    return %c0_i32, %c0_i32_0 : i32, i32
  }
  func.func @transform_3(%arg0: i32, %arg1: i32) -> (i32, i32) {
    %c0_i32 = arith.constant 0 : i32
    %c0_i32_0 = arith.constant 0 : i32
    %c0_i32_1 = arith.constant 0 : i32
    return %c0_i32, %c0_i32_0 : i32, i32
  }
  func.func @transform_4(%arg0: i32, %arg1: i32) -> (i32, i32) {
    %c0_i32 = arith.constant 0 : i32
    %c0_i32_0 = arith.constant 0 : i32
    %c0_i32_1 = arith.constant 0 : i32
    return %c0_i32, %c0_i32_0 : i32, i32
  }
  func.func @transform_5(%arg0: i32, %arg1: i32) -> (i32, i32, i32) {
    %c0_i32 = arith.constant 0 : i32
    %c0_i32_0 = arith.constant 0 : i32
    return %arg0, %c0_i32, %arg1 : i32, i32, i32
  }
}

</mosaic_0001>

<bundles_post_ra>
// kernel: tpu_custom_call.1
= control target key start
LH: loop header
LB: loop body
LE: loop exit
PB: predicated region body
PF: predicated region fallthrough
CT: control target
= control target key end

     0   :  { %s623_s18 = smov 0   ;;  %s625_s19 = smov 0   ;;  %s676_s0 = inlined_call_operand.vmem [shape: f32[2,3,324], index: 0, kind: input, shape index: {}]   ;;  %s677_s1 = inlined_call_operand.vmem [shape: f32[6,3], index: 1, kind: input, shape index: {}]   ;;  %s678_s2 = inlined_call_operand.vmem [shape: f32[6,1], index: 2, kind: input, shape index: {}]   ;;  %s679_s3 = inlined_call_operand.vmem [shape: f32[6,3], index: 3, kind: input, shape index: {}]   ;;  %s680_s4 = inlined_call_operand.vmem [shape: f32[6,1], index: 4, kind: input, shape index: {}]   ;;  %s681_s5 = inlined_call_operand.vmem [shape: f32[2,6,324], index: 5, kind: output, shape index: {}]  }
   0x1   :  { %s627_s20 = smov 0  }
   0x2 LB: > { %s27_s21 = sadd.s32 1, %s584_s19  ;;  %p526_p0 = scmp.ge.s32.totalorder %s588_s20, 1  ;;  %s588_s20 = sphi %s627_s20, %s15_s20   ;;  %s584_s19 = sphi %s625_s19, %s683_s19   ;;  %s580_s18 = sphi %s623_s18, %s682_s18  }
   0x3   : > { %p29_p1 = scmp.ge.s32.totalorder %s27_s21, 2  ;;  %p208_p2 = scmp.lt.s32.totalorder %s588_s20, 3 }
   0x5   : > { %s685_s21 = smov (%p29_p1, %s27_s21), 0  ;;  %p209_p3 = pnand %p526_p0, %p208_p2 }
   0x6   : > { %v278_v0 = vld [vmem:[%s677_s1] sm:$0x3f] (!%p209_p3)  ;;  %v590_v2 = vmov (!%p209_p3), 0   ;;  %v591_v5 = vmov (!%p209_p3), 1   ;;  %v592_v6 = vmov (!%p209_p3), 2   ;;  %p245_p4 = scmp.lt.s32.totalorder (!%p209_p3), %s580_s18, 1  ;;  %v286_v7 = vlaneseq (!%p209_p3) }
   0x7   : > { %212 = sbr.rel (%p209_p3) target bundleno = 160 (0xa0), region = 40  ;;  %v266_v1 = vld [vmem:[%s678_s2] sm:$0x3f] (!%p209_p3)  ;;  %561 = vset.pattern.permute.xlu1 (!%p209_p3), %v590_v2  ;;  %560 = vset.pattern.permute.xlu0 (!%p209_p3), %v590_v2  ;;  %vm433_vm0 = vcmask (!%p209_p3), 553984  }
   0x8   : > { %281 = vperm.xlu0 (!%p209_p3), %560, %v278_v0   ;;  %269 = vperm.xlu1 (!%p209_p3), %561, %v266_v1   ;;  %v319_v3 = vld [vmem:[%s679_s3] sm:$0x3f] (!%p209_p3)  ;;  %v287_v8 = vshrl.u32 (!%p209_p3), %v286_v7, 7 }
   0x9   : > { %v272_v4 = vld [vmem:[%s680_s4] sm:$0x3f] (!%p209_p3) }
   0xa   : > { %v288_v9 = vsub.s32 (!%p209_p3), 0, %v287_v8  ;;  %v292_v11 = vsub.s32 (!%p209_p3), 4, %v287_v8  ;;  %v337_v13 = vsub.s32 (!%p209_p3), 1, %v287_v8  ;;  %v341_v15 = vsub.s32 (!%p209_p3), 5, %v287_v8 }
   0xb   : > { %v384_v20 = vsub.s32 (!%p209_p3), 2, %v287_v8  ;;  %v388_v22 = vsub.s32 (!%p209_p3), 6, %v287_v8 }
   0xc   : > { %322 = vperm.xlu0 (!%p209_p3), %560, %v319_v3   ;;  %275 = vperm.xlu1 (!%p209_p3), %561, %v272_v4  }
   0xe   : > { %s687_s18 = smov (!%p245_p4, %s580_s18), 1 }
   0xf   : > { %s531_s30 = smul.u32 12, %s687_s18 }
  0x10   : > { %562 = vset.pattern.permute.xlu0 %v591_v5  ;;  %563 = vset.pattern.permute.xlu1 %v591_v5  ;;  %s532_s9 = smul.u32 24, %s687_s18 }
  0x11   : > { %332 = vperm.xlu0 %562, %v278_v0   ;;  %369 = vperm.xlu1 %563, %v319_v3   ;;  %s252_s8 = scalar_lea.vmem %s676_s0, %s531_s30 }
  0x12   : > { %v264_v10 = vld [vmem:[%s252_s8] sm:$0x77]  ;;  %v265_v12 = vld [vmem:[%s252_s8 + $0x8] sm:$0x7]  ;;  %s262_s12 = scalar_lea.vmem %s681_s5, %s532_s9 }
  0x13   : > { %v289_v14 = vrot.slane %v264_v10, %v288_v9  ;;  %v293_v18 = vrot.slane %v264_v10, %v292_v11  ;;  %v297_v19 = vrot.slane %v265_v12, %v288_v9  ;;  %v338_v21 = vrot.slane %v264_v10, %v337_v13 }
  0x14   : > { %v342_v24 = vrot.slane %v264_v10, %v341_v15  ;;  %v346_v25 = vrot.slane %v265_v12, %v337_v13  ;;  %v385_v30 = vrot.slane %v264_v10, %v384_v20  ;;  %v389_v32 = vrot.slane %v264_v10, %v388_v22 }
  0x15   : > { %565 = vset.pattern.permute.xlu0 %v592_v6  ;;  %564 = vset.pattern.permute.xlu1 %v592_v6  ;;  %v304_v23 = vrot.slane %v289_v14, %v288_v9  ;;  %v308_v28 = vrot.slane %v293_v18, %v288_v9  ;;  %v312_v29 = vrot.slane %v297_v19, %v288_v9 }
  0x16   : > { %416 = vperm.xlu0 %565, %v319_v3   ;;  %379 = vperm.xlu1 %564, %v278_v0   ;;  %v353_v31 = vrot.slane %v338_v21, %v337_v13  ;;  %v393_v33 = vrot.slane %v265_v12, %v384_v20  ;;  %v357_v36 = vrot.slane %v342_v24, %v337_v13 }
  0x17   : > { %v361_v37 = vrot.slane %v346_v25, %v337_v13  ;;  %v400_v44 = vrot.slane %v385_v30, %v384_v20  ;;  %v404_v47 = vrot.slane %v389_v32, %v384_v20 }
  0x18   : > { %v408_v48 = vrot.slane %v393_v33, %v384_v20 }
  0x87   : > { %v282_v16 = vpop.permute.xlu0 %281  ;;  %v270_v17 = vpop.permute.xlu1 %269 }
  0x88   : > { %v313_v34 = vmul.f32 %v304_v23, %v282_v16  ;;  %v314_v40 = vmul.f32 %v308_v28, %v282_v16  ;;  %v315_v41 = vmul.f32 %v312_v29, %v282_v16 }
  0x8a   : > { %v316_v49 = vadd.f32 %v313_v34, %v270_v17  ;;  %v317_v57 = vadd.f32 %v314_v40, %v270_v17  ;;  %v318_v58 = vadd.f32 %v315_v41, %v270_v17 }
  0x8b   : > { %v323_v26 = vpop.permute.xlu0 %322  ;;  %v276_v27 = vpop.permute.xlu1 %275 }
  0x8c   : > { %v325_v35 = vmul.f32 %v323_v26, %v304_v23  ;;  %v326_v38 = vmul.f32 %v323_v26, %v308_v28  ;;  %v327_v39 = vmul.f32 %v323_v26, %v312_v29 }
  0x8e   : > { %v328_v50 = vadd.f32 %v325_v35, %v276_v27  ;;  %v329_v53 = vadd.f32 %v326_v38, %v276_v27  ;;  %v330_v54 = vadd.f32 %v327_v39, %v276_v27 }
  0x90   : > { %v333_v42 = vpop.permute.xlu0 %332  ;;  %v370_v43 = vpop.permute.xlu1 %369 }
  0x91   : > { %v362_v45 = vmul.f32 %v353_v31, %v333_v42  ;;  %v372_v46 = vmul.f32 %v370_v43, %v353_v31  ;;  %v373_v51 = vmul.f32 %v370_v43, %v357_v36  ;;  %v374_v52 = vmul.f32 %v370_v43, %v361_v37 }
  0x92   : > { %v363_v55 = vmul.f32 %v357_v36, %v333_v42  ;;  %v364_v56 = vmul.f32 %v361_v37, %v333_v42 }
  0x93   : > { %v365_v59 = vadd.f32 %v362_v45, %v316_v49  ;;  %v375_v60 = vadd.f32 %v372_v46, %v328_v50  ;;  %v376_v61 = vadd.f32 %v373_v51, %v329_v53  ;;  %v377_v62 = vadd.f32 %v374_v52, %v330_v54 }
  0x94   : > { %v366_v5 = vadd.f32 %v363_v55, %v317_v57  ;;  %v367_v6 = vadd.f32 %v364_v56, %v318_v58 }
  0x95   : > { %v417_v63 = vpop.permute.xlu0 %416  ;;  %v380_v0 = vpop.permute.xlu1 %379 }
  0x96   : > { %v419_v1 = vmul.f32 %v417_v63, %v400_v44  ;;  %v420_v2 = vmul.f32 %v417_v63, %v404_v47  ;;  %v421_v3 = vmul.f32 %v417_v63, %v408_v48  ;;  %v409_v4 = vmul.f32 %v400_v44, %v380_v0 }
  0x97   : > { %v410_v7 = vmul.f32 %v404_v47, %v380_v0  ;;  %v411_v8 = vmul.f32 %v408_v48, %v380_v0 }
  0x98   : > { %v422_v9 = vadd.f32 %v419_v1, %v375_v60  ;;  %v423_v10 = vadd.f32 %v420_v2, %v376_v61  ;;  %v424_v11 = vadd.f32 %v421_v3, %v377_v62  ;;  %v412_v12 = vadd.f32 %v409_v4, %v365_v59 }
  0x99   : > { %v413_v13 = vadd.f32 %v410_v7, %v366_v5  ;;  %v414_v14 = vadd.f32 %v411_v8, %v367_v6 }
  0x9a   : > { %v425_v15 = vmax.f32 %v412_v12, %v422_v9 }
  0x9b   : > { %v426_v16 = vmax.f32 %v413_v13, %v423_v10  ;;  %v427_v17 = vmax.f32 %v414_v14, %v424_v11 }
  0x9c   : > { %v428_v18 = vmax.f32 %v425_v15, 0.0 }
  0x9d   : > { %v429_v19 = vmax.f32 %v426_v16, 0.0  ;;  %v430_v20 = vmax.f32 %v427_v17, 0.0 }
  0x9e   : > { %431 = vst [vmem:[%s262_s12] sm:$0x3f] %v428_v18 }
  0x9f   : > { %432 = vst [vmem:[%s262_s12 + $0x8] sm:$0x3f] %v429_v19  ;;  %434 = vst.msk [vmem:[%s262_s12 + $0x10] sm:$0x3f] %vm433_vm0, %v430_v20 }
  0xa0 PF: > { %s15_s20 = sadd.s32 1, %s588_s20   ;;  %s682_s18 = smov %s584_s19 }
  0xa1   : > { %p12_p5 = scmp.ge.s32.totalorder %s15_s20, 4   ;;  %s683_s19 = smov %s685_s21 }
  0xa3   :  { %14 = sbr.rel (!%p12_p5) target bundleno = 2 (0x2), region = 70 }

</bundles_post_ra>
